<compile_context>
chip_gen: v7x
topology: tpu7x:2x2x1
jax: 0.10.0
libtpu: 0.0.40
codegen_flags: <defaults>
</compile_context>

<pallas_src>
import functools

import jax
import jax.numpy as jnp
from jax import lax
from jax.experimental import pallas as pl
from jax.experimental.pallas import tpu as pltpu


# --------------------------------------------------------------------------
# Kernel
# --------------------------------------------------------------------------
def _sdpa_kernel(q_ref, k_ref, v_ref, mask_ref, out_ref, *attn_refs,
                 inv_temperature, current, approx_reciprocal):
    # q_ref: (T, Lq, D), k_ref/v_ref: (T, Lk, D), mask_ref: (Lq, Lk) int8.
    q = q_ref[...]
    k = k_ref[...]
    v = v_ref[...]

    # scores = q @ k^T, contracting D directly on the MXU (no materialized
    # transpose of k), batched over the fused (batch*head) block axis.
    scores = lax.dot_general(
        q, k,
        dimension_numbers=(((2,), (2,)), ((0,), (0,))),
        preferred_element_type=jnp.float32)                  # (T, Lq, Lk) f32

    # Additive mask bias from the small shared (Lq, Lk) tile:
    #   keep == 1 -> 0, keep == 0 -> -1e32 (same fill value as the reference).
    keep = mask_ref[...].astype(jnp.float32)                 # (Lq, Lk) {0,1}
    bias = (keep - jnp.float32(1.0)) * jnp.float32(1e32)
    # Apply 1/temperature to the f32 scores (full f32 precision; fewer
    # elements than scaling q when Lk < D), then add the mask bias.
    scores = scores * jnp.float32(inv_temperature) + bias[None]

    # Softmax over keys (f32 numerics).  exp(scores - max) is exactly 0 at
    # masked positions of partially-masked rows, so the reference's trailing
    # `attn * mask` only matters for fully-masked rows and for the
    # current == 1 first-row zeroing; both are folded into the (T, Lq, 1)
    # normalization factor below instead of a full (T, Lq, Lk) multiply.
    s_max = jnp.max(scores, axis=-1, keepdims=True)
    e = jnp.exp(scores - s_max)
    denom = jnp.sum(e, axis=-1, keepdims=True)
    inv = pl.reciprocal(denom, approx=approx_reciprocal)     # EUP slot

    row_keep = jnp.max(keep, axis=-1, keepdims=True)         # (Lq, 1), 0/1
    if current == 1:
        row_ids = lax.broadcasted_iota(jnp.int32, row_keep.shape, 0)
        row_keep = jnp.where(row_ids == 0, jnp.float32(0.0), row_keep)
    inv = inv * row_keep[None]

    attn = e * inv                                           # (T, Lq, Lk) f32

    # TODO(synk): nn.Dropout(0.1) is identity in eval mode; training-time
    # stochastic dropout (pltpu.prng_*) is intentionally not implemented.

    # output = attn @ v (probabilities cast to v's dtype so bf16 inputs get a
    # bf16 MXU matmul; accumulation stays f32).
    out = lax.dot_general(
        attn.astype(v.dtype), v,
        dimension_numbers=(((2,), (1,)), ((0,), (0,))),
        preferred_element_type=jnp.float32)                  # (T, Lq, D)

    out_ref[...] = out.astype(out_ref.dtype)
    if attn_refs:
        attn_refs[0][...] = attn.astype(attn_refs[0].dtype)


# --------------------------------------------------------------------------
# Hardware-aware sizing helpers
# --------------------------------------------------------------------------
def _tpu_vmem_and_cores():
    """(per-core VMEM bytes, TensorCores per chip), with safe fallbacks."""
    vmem_bytes = None
    num_cores = None
    try:
        info = pltpu.get_tpu_info()
        vmem_bytes = getattr(info, "vmem_capacity_bytes", None)
        for attr in ("num_cores", "num_tensorcores", "tensorcores_per_chip",
                     "cores_per_chip"):
            val = getattr(info, attr, None)
            if val:
                num_cores = int(val)
                break
    except Exception:
        pass
    if vmem_bytes is None:
        vmem_bytes = 64 * 1024 * 1024        # conservative (v7x-class per-TC)
    vmem_bytes = int(vmem_bytes)
    if num_cores is None:
        # Heuristic: 64 MiB-per-core chips (v7x-class) have 2 TensorCores;
        # 128 MiB-class chips (v5e/v6e) have 1.
        num_cores = 2 if vmem_bytes <= 64 * 1024 * 1024 else 1
    return vmem_bytes, int(num_cores)


def _pick_heads_per_step(B, H, Lq, Lk, D, *, q_itemsize, attn_itemsize,
                         vmem_budget, num_cores, return_attn):
    """Largest divisor of H whose block fits the VMEM budget; on multi-TC
    chips prefer divisors whose fused grid splits evenly across the cores."""
    def fits(t):
        in_bytes = 2 * q_itemsize * t * (Lq * D + 2 * Lk * D)   # dbl-buffered
        mask_bytes = 2 * 4 * Lq * Lk
        out_bytes = 2 * q_itemsize * t * Lq * D
        attn_bytes = (2 * attn_itemsize * t * Lq * Lk) if return_attn else 0
        interm = 4 * t * (3 * Lq * Lk + Lq * D)                 # f32 live vals
        return in_bytes + mask_bytes + out_bytes + attn_bytes + interm \
            <= vmem_budget

    divisors = [t for t in range(1, H + 1) if H % t == 0]
    fitting = [t for t in divisors if fits(t)] or [1]

    if num_cores <= 1:
        # Single TensorCore: the grid is a serial loop; just take the largest
        # block that fits (grid == 1 is fine).
        return max(fitting)

    def grid(t):
        return (B * H) // t

    pref2 = [t for t in fitting
             if grid(t) % num_cores == 0 and grid(t) >= 2 * num_cores]
    pref1 = [t for t in fitting if grid(t) % num_cores == 0]
    if pref2:
        return max(pref2)
    if pref1:
        return max(pref1)
    return max(fitting)


# --------------------------------------------------------------------------
# Wrapper
# --------------------------------------------------------------------------
def scaled_dot_product_attention(q, k, v, current, mask, *, temperature,
                                 heads_per_step=None, return_attn=True,
                                 attn_dtype=None, approx_reciprocal=True):
    """q, k, v: [B, H, L, D]; mask broadcastable to [B, 1, Lq, Lk] (0/1).

    Returns (output [B,H,Lq,D], attn [B,H,Lq,Lk] or None)."""
    B, H, Lq, D = q.shape
    Lk = k.shape[2]
    if attn_dtype is None:
        attn_dtype = q.dtype

    # ---- mask: normalize to a compact (Bm, Lq, Lk) int8 {0,1} tensor.
    # Never broadcast over heads, and only carry a batch axis if the caller
    # supplied one (Bm in {1, B}).
    m = jnp.asarray(mask)
    if m.ndim == 4:
        assert m.shape[1] == 1, "per-head masks are not supported"
        m = m[:, 0]
    elif m.ndim == 2:
        m = m[None]
    assert m.ndim == 3
    Bm = m.shape[0]
    assert Bm in (1, B), f"mask batch dim must be 1 or {B}, got {Bm}"
    m = jnp.broadcast_to(m, (Bm, Lq, Lk))
    mask_i8 = (m != 0).astype(jnp.int8)

    # ---- generation-aware VMEM budgeting (same number for the picker, minus
    # ~20% headroom, and for the compiler limit).
    vmem_cap, num_cores = _tpu_vmem_and_cores()
    vmem_limit = max(16 * 1024 * 1024,
                     min((vmem_cap * 3) // 4, 100 * 1024 * 1024))
    picker_budget = (vmem_limit * 4) // 5

    if heads_per_step is None:
        heads_per_step = _pick_heads_per_step(
            B, H, Lq, Lk, D,
            q_itemsize=jnp.dtype(q.dtype).itemsize,
            attn_itemsize=jnp.dtype(attn_dtype).itemsize,
            vmem_budget=picker_budget,
            num_cores=num_cores,
            return_attn=return_attn)
    tbh = int(heads_per_step)
    assert H % tbh == 0, "heads_per_step must divide H"
    grid = (B * H) // tbh
    blocks_per_batch = H // tbh  # mask batch index = g // blocks_per_batch

    # Fuse B and H (free reshape; arrays are contiguous).
    qf = q.reshape(B * H, Lq, D)
    kf = k.reshape(B * H, Lk, D)
    vf = v.reshape(B * H, Lk, D)

    if Bm == B:
        mask_map = lambda g: (g // blocks_per_batch, 0, 0)
    else:
        mask_map = lambda g: (0, 0, 0)

    kernel = functools.partial(
        _sdpa_kernel,
        inv_temperature=1.0 / float(temperature),
        current=int(current),
        approx_reciprocal=bool(approx_reciprocal))

    out_shapes = [jax.ShapeDtypeStruct((B * H, Lq, D), q.dtype)]
    out_specs = [pl.BlockSpec((tbh, Lq, D), lambda g: (g, 0, 0))]
    if return_attn:
        out_shapes.append(jax.ShapeDtypeStruct((B * H, Lq, Lk), attn_dtype))
        out_specs.append(pl.BlockSpec((tbh, Lq, Lk), lambda g: (g, 0, 0)))

    # TODO(synk): for long sequences (Lq*Lk f32 intermediates > ~half the VMEM
    # budget) add an Lk grid axis with flash-style online softmax (running
    # max/sum/acc scratch, init/finalize via pl.when, axis marked
    # "arbitrary"); a no-op at L=16 so not implemented here.
    grid_spec = pltpu.PrefetchScalarGridSpec(
        num_scalar_prefetch=0,
        grid=(grid,),
        in_specs=[
            pl.BlockSpec((tbh, Lq, D), lambda g: (g, 0, 0)),
            pl.BlockSpec((tbh, Lk, D), lambda g: (g, 0, 0)),
            pl.BlockSpec((tbh, Lk, D), lambda g: (g, 0, 0)),
            # Mask: indexed by batch only; all heads in a block share it.
            pl.BlockSpec((None, Lq, Lk), mask_map),
        ],
        out_specs=out_specs,
    )

    results = pl.pallas_call(
        kernel,
        grid_spec=grid_spec,
        out_shape=tuple(out_shapes),
        compiler_params=pltpu.CompilerParams(
            dimension_semantics=("parallel",),
            vmem_limit_bytes=int(vmem_limit)),
    )(qf, kf, vf, mask_i8)

    out = results[0].reshape(B, H, Lq, D)
    if return_attn:
        return out, results[1].reshape(B, H, Lq, Lk)
    return out, None


# --------------------------------------------------------------------------
# Self-test
# --------------------------------------------------------------------------
if __name__ == "__main__":
    key = jax.random.PRNGKey(0)
    kq, kk, kv, kg = jax.random.split(key, 4)

    B, H, L, D = 2, 8, 16, 32            # batch, n_heads=8, seq, head_dim
    temperature = float(D) ** 0.5

    q = jax.random.normal(kq, (B, H, L, D), dtype=jnp.float32)
    k = jax.random.normal(kk, (B, H, L, D), dtype=jnp.float32)
    v = jax.random.normal(kv, (B, H, L, D), dtype=jnp.float32)

    # Parameter from __init__: gammas = torch.rand(1). Unused in the forward
    # pass (the time-decay block is a commented-out string in the spec).
    gammas = jax.random.uniform(kg, (1,), dtype=jnp.float32)
    _ = gammas

    # Causal mask with a singleton batch dim (1, 1, L, L) — the wrapper keeps
    # it un-broadcast in HBM and reuses it for every batch/head block.
    causal = jnp.tril(jnp.ones((L, L), dtype=jnp.float32))
    mask = causal[None, None, :, :]

    # Pure-JAX reference.
    def reference(q, k, v, current, mask):
        scores = jnp.einsum("bhqd,bhkd->bhqk", q / temperature, k)
        mfull = jnp.broadcast_to(mask, (B, H, L, L))
        scores = jnp.where(mfull == 0, -1e32, scores)
        attn = jax.nn.softmax(scores, axis=-1)
        if current == 1:
            attn = attn.at[:, :, 0, :].set(0.0)
        attn = attn * mfull
        out = jnp.einsum("bhqk,bhkd->bhqd", attn, v)
        return out, attn

    ok = True
    for current in (1, 0):
        out, attn = scaled_dot_product_attention(
            q, k, v, current, mask, temperature=temperature)
        jax.block_until_ready((out, attn))
        out_ref, attn_ref = reference(q, k, v, current, mask)
        # Tolerance loosened slightly for the EUP approximate-reciprocal
        # softmax denominator.
        ok &= bool(jnp.allclose(attn, attn_ref, atol=5e-3, rtol=5e-3))
        ok &= bool(jnp.allclose(out, out_ref, atol=5e-3, rtol=5e-3))

    assert ok
    print("KERNEL_OK")
</pallas_src>

<mosaic_0001>
module attributes {stable_mosaic.version = 11 : i64} {
  func.func @_sdpa_kernel(%arg0: i32, %arg1: memref<4x16x32xf32, #tpu.memory_space<vmem>>, %arg2: memref<4x16x32xf32, #tpu.memory_space<vmem>>, %arg3: memref<4x16x32xf32, #tpu.memory_space<vmem>>, %arg4: memref<1x16x16xi8, #tpu.memory_space<vmem>>, %arg5: memref<4x16x32xf32, #tpu.memory_space<vmem>>, %arg6: memref<4x16x16xf32, #tpu.memory_space<vmem>>) attributes {dimension_semantics = [#tpu.dimension_semantics<parallel>], iteration_bounds = array<i64: 4>, scalar_prefetch = 0 : i64, scratch_operands = 0 : i64, tpu.core_type = #tpu.core_type<tc>, window_params = [{transform_indices = @transform_0, window_bounds = array<i64: 4, 16, 32>}, {transform_indices = @transform_1, window_bounds = array<i64: 4, 16, 32>}, {transform_indices = @transform_2, window_bounds = array<i64: 4, 16, 32>}, {pipeline_mode = #tpu.pipeline_mode<synchronous>, transform_indices = @transform_3, window_bounds = array<i64: 1, 16, 16>}, {transform_indices = @transform_4, window_bounds = array<i64: 4, 16, 32>}, {transform_indices = @transform_5, window_bounds = array<i64: 4, 16, 16>}]} {
    %c0 = arith.constant 0 : index
    %c0_0 = arith.constant 0 : index
    %c0_1 = arith.constant 0 : index
    %0 = vector.load %arg1[%c0, %c0_0, %c0_1] : memref<4x16x32xf32, #tpu.memory_space<vmem>>, vector<4x16x32xf32>
    %c0_2 = arith.constant 0 : index
    %c0_3 = arith.constant 0 : index
    %c0_4 = arith.constant 0 : index
    %1 = vector.load %arg2[%c0_2, %c0_3, %c0_4] : memref<4x16x32xf32, #tpu.memory_space<vmem>>, vector<4x16x32xf32>
    %c0_5 = arith.constant 0 : index
    %c0_6 = arith.constant 0 : index
    %c0_7 = arith.constant 0 : index
    %2 = vector.load %arg3[%c0_5, %c0_6, %c0_7] : memref<4x16x32xf32, #tpu.memory_space<vmem>>, vector<4x16x32xf32>
    %cst = arith.constant dense<0.000000e+00> : vector<4x16x16xf32>
    %3 = tpu.matmul %0, %1, %cst {dimension_numbers = #tpu.dot_dimension_numbers<[2], [2], [1], [1], [0, 0, 0, 1, 1, 1], [0], [0]>} : vector<4x16x32xf32>, vector<4x16x32xf32>, vector<4x16x16xf32> -> vector<4x16x16xf32>
    %c0_8 = arith.constant 0 : index
    %c0_9 = arith.constant 0 : index
    %c0_10 = arith.constant 0 : index
    %4 = vector.load %arg4[%c0_8, %c0_9, %c0_10] : memref<1x16x16xi8, #tpu.memory_space<vmem>>, vector<1x16x16xi8>
    %5 = vector.shape_cast %4 : vector<1x16x16xi8> to vector<16x16xi8>
    %6 = arith.sitofp %5 : vector<16x16xi8> to vector<16x16xf32>
    %cst_11 = arith.constant 1.000000e+00 : f32
    %7 = vector.broadcast %cst_11 : f32 to vector<16x16xf32>
    %8 = arith.subf %6, %7 : vector<16x16xf32>
    %cst_12 = arith.constant 1.000000e+32 : f32
    %9 = vector.broadcast %cst_12 : f32 to vector<16x16xf32>
    %10 = arith.mulf %8, %9 : vector<16x16xf32>
    %cst_13 = arith.constant 0.176776692 : f32
    %11 = vector.broadcast %cst_13 : f32 to vector<4x16x16xf32>
    %12 = arith.mulf %3, %11 : vector<4x16x16xf32>
    %13 = vector.shape_cast %10 : vector<16x16xf32> to vector<1x16x16xf32>
    %14 = vector.broadcast %13 : vector<1x16x16xf32> to vector<4x16x16xf32>
    %15 = arith.addf %12, %14 : vector<4x16x16xf32>
    %cst_14 = arith.constant dense<0xFF800000> : vector<4x16xf32>
    %16 = vector.multi_reduction <maximumf>, %15, %cst_14 [2] : vector<4x16x16xf32> to vector<4x16xf32>
    %17 = vector.shape_cast %16 : vector<4x16xf32> to vector<4x16x1xf32>
    %18 = vector.broadcast %17 : vector<4x16x1xf32> to vector<4x16x16xf32>
    %19 = arith.subf %15, %18 : vector<4x16x16xf32>
    %20 = math.exp %19 : vector<4x16x16xf32>
    %cst_15 = arith.constant dense<0.000000e+00> : vector<4x16xf32>
    %21 = vector.multi_reduction <add>, %20, %cst_15 [2] : vector<4x16x16xf32> to vector<4x16xf32>
    %22 = vector.shape_cast %21 : vector<4x16xf32> to vector<4x16x1xf32>
    %23 = tpu.reciprocal %22 {approx = true} : vector<4x16x1xf32> -> vector<4x16x1xf32>
    %cst_16 = arith.constant dense<0xFF800000> : vector<16xf32>
    %24 = vector.multi_reduction <maximumf>, %6, %cst_16 [1] : vector<16x16xf32> to vector<16xf32>
    %25 = vector.shape_cast %24 : vector<16xf32> to vector<16x1xf32>
    %26 = tpu.iota {dimensions = array<i32: 0>} : vector<16x1xi32>
    %c0_i32 = arith.constant 0 : i32
    %27 = vector.broadcast %c0_i32 : i32 to vector<16x1xi32>
    %28 = arith.cmpi eq, %26, %27 : vector<16x1xi32>
    %cst_17 = arith.constant 0.000000e+00 : f32
    %29 = vector.broadcast %cst_17 : f32 to vector<16x1xf32>
    %30 = arith.select %28, %29, %25 : vector<16x1xi1>, vector<16x1xf32>
    %31 = vector.shape_cast %30 : vector<16x1xf32> to vector<1x16x1xf32>
    %32 = vector.broadcast %31 : vector<1x16x1xf32> to vector<4x16x1xf32>
    %33 = arith.mulf %23, %32 : vector<4x16x1xf32>
    %34 = vector.broadcast %33 : vector<4x16x1xf32> to vector<4x16x16xf32>
    %35 = arith.mulf %20, %34 : vector<4x16x16xf32>
    %cst_18 = arith.constant dense<0.000000e+00> : vector<4x16x32xf32>
    %36 = tpu.matmul %35, %2, %cst_18 {dimension_numbers = #tpu.dot_dimension_numbers<[2], [1], [1], [2], [0, 0, 0, 1, 1, 2], [0], [0]>} : vector<4x16x16xf32>, vector<4x16x32xf32>, vector<4x16x32xf32> -> vector<4x16x32xf32>
    %c0_19 = arith.constant 0 : index
    %c0_20 = arith.constant 0 : index
    %c0_21 = arith.constant 0 : index
    %37 = vector.load %arg5[%c0_19, %c0_20, %c0_21] : memref<4x16x32xf32, #tpu.memory_space<vmem>>, vector<4x16x32xf32>
    tpu.vector_store %arg5[%c0_19, %c0_20, %c0_21], %36 {strides = array<i32>} : memref<4x16x32xf32, #tpu.memory_space<vmem>>, vector<4x16x32xf32>,
    %c0_22 = arith.constant 0 : index
    %c0_23 = arith.constant 0 : index
    %c0_24 = arith.constant 0 : index
    %38 = vector.load %arg6[%c0_22, %c0_23, %c0_24] : memref<4x16x16xf32, #tpu.memory_space<vmem>>, vector<4x16x16xf32>
    tpu.vector_store %arg6[%c0_22, %c0_23, %c0_24], %35 {strides = array<i32>} : memref<4x16x16xf32, #tpu.memory_space<vmem>>, vector<4x16x16xf32>,
    return
  }
  func.func @transform_0(%arg0: i32) -> (i32, i32, i32) {
    %c0_i32 = arith.constant 0 : i32
    %c0_i32_0 = arith.constant 0 : i32
    %c0_i32_1 = arith.constant 0 : i32
    return %arg0, %c0_i32, %c0_i32_0 : i32, i32, i32
  }
  func.func @transform_1(%arg0: i32) -> (i32, i32, i32) {
    %c0_i32 = arith.constant 0 : i32
    %c0_i32_0 = arith.constant 0 : i32
    %c0_i32_1 = arith.constant 0 : i32
    return %arg0, %c0_i32, %c0_i32_0 : i32, i32, i32
  }
  func.func @transform_2(%arg0: i32) -> (i32, i32, i32) {
    %c0_i32 = arith.constant 0 : i32
    %c0_i32_0 = arith.constant 0 : i32
    %c0_i32_1 = arith.constant 0 : i32
    return %arg0, %c0_i32, %c0_i32_0 : i32, i32, i32
  }
  func.func @transform_3(%arg0: i32) -> (i32, i32, i32) {
    %c0_i32 = arith.constant 0 : i32
    %c0_i32_0 = arith.constant 0 : i32
    %c0_i32_1 = arith.constant 0 : i32
    %c0_i32_2 = arith.constant 0 : i32
    return %c0_i32, %c0_i32_0, %c0_i32_1 : i32, i32, i32
  }
  func.func @transform_4(%arg0: i32) -> (i32, i32, i32) {
    %c0_i32 = arith.constant 0 : i32
    %c0_i32_0 = arith.constant 0 : i32
    %c0_i32_1 = arith.constant 0 : i32
    return %arg0, %c0_i32, %c0_i32_0 : i32, i32, i32
  }
  func.func @transform_5(%arg0: i32) -> (i32, i32, i32) {
    %c0_i32 = arith.constant 0 : i32
    %c0_i32_0 = arith.constant 0 : i32
    %c0_i32_1 = arith.constant 0 : i32
    return %arg0, %c0_i32, %c0_i32_0 : i32, i32, i32
  }
}

</mosaic_0001>

<bundles_post_ra>
// kernel: tpu_custom_call.1
= control target key start
LH: loop header
LB: loop body
LE: loop exit
PB: predicated region body
PF: predicated region fallthrough
CT: control target
= control target key end

     0   :  { %s2339_s0 = inlined_call_operand.hbm [shape: f32[16,16,32], index: 0, kind: input, shape index: {}]   ;;  %s2340_s1 = inlined_call_operand.hbm [shape: f32[16,16,32], index: 1, kind: input, shape index: {}]   ;;  %s2341_s2 = inlined_call_operand.hbm [shape: f32[16,16,32], index: 2, kind: input, shape index: {}]   ;;  %s2342_s3 = inlined_call_operand.vmem [shape: s8[1,16,16], index: 3, kind: input, shape index: {}]   ;;  %s2343_s4 = inlined_call_operand.hbm [shape: f32[16,16,32], index: 4, kind: output, shape index: {0}]   ;;  %s2344_s5 = inlined_call_operand.hbm [shape: f32[16,16,16], index: 5, kind: output, shape index: {1}]  }
   0x1   :  { %2352 = sst [smem:[#allocation16_spill]] %s2339_s0 }
   0x2   :  { %2353 = sst [smem:[#allocation17_spill]] %s2340_s1 }
   0x3   :  { %11 = vsyncpa [#allocation3], 0 }
   0x4   :  { %13 = vsyncpa [#allocation3 + $0x1], 0 }
   0x5   :  { %14 = vsyncpa [#allocation6], 0 }
   0x6   :  { %16 = vsyncpa [#allocation6 + $0x1], 0 }
   0x7   :  { %17 = vsyncpa [#allocation4], 0 }
   0x8   :  { %19 = vsyncpa [#allocation4 + $0x1], 0 }
   0x9   :  { %20 = vsyncpa [#allocation10], 0 }
   0xa   :  { %22 = vsyncpa [#allocation10 + $0x1], 0  ;;  %s1902_s18 = smov 0   ;;  %s1904_s19 = smov 0  }
   0xb   :  { %s1906_s20 = smov 0   ;;  %s1908_s21 = smov 0  }
   0xc LB: > { %s1923_s22 = sadd.s32 4294967295, %s1861_s21   ;;  %s1373_s23 = sadd.s32 4294967294, %s1861_s21   ;;  %s1861_s21 = sphi %s1908_s21, %s2377_s21   ;;  %s1857_s20 = sphi %s1906_s20, %s2376_s20   ;;  %s1853_s19 = sphi %s1904_s19, %s2375_s19   ;;  %s1849_s18 = sphi %s1902_s18, %s2374_s18  }
   0xd   : > { %s1927_s24 = sadd.s32 1, %s1861_s21   ;;  %s35_s25 = sadd.s32 1, %s1857_s20 }
   0xe   : > { %s32_s26 = ssub.s32 %s1861_s21, %s1927_s24  ;;  %p42_p0 = scmp.ne.s32.totalorder %s1857_s20, %s1853_s19 }
   0xf   : > { %p33_p1 = scmp.eq.s32.totalorder %s32_s26, 0  ;;  %p43_p2 = scmp.eq.s32.totalorder %s1861_s21, 0 }
  0x10   : > { %p48_p3 = scmp.ne.s32.totalorder %s1853_s19, %s1849_s18  ;;  %p49_p4 = scmp.eq.s32.totalorder %s1923_s22, 0 }
  0x11   : > { %s1939_s27 = scalar_select %p33_p1, %s1857_s20, %s35_s25  }
  0x12   : > { %p44_p5 = por %p43_p2, %p42_p0  ;;  %p1941_p6 = por %p49_p4, %p48_p3 }
  0x13   : > { %2354 = sst [smem:[#allocation15_spill]] %s1939_s27  ;;  %p145_p7 = scmp.eq.s32.totalorder %s1923_s22, 3 }
  0x14   : > { %s2355_s28 = scalar_select %p1941_p6, 1, 0 }
  0x15   : > { %p151_p8 = scmp.eq.s32.totalorder %s1373_s23, 3  ;;  %p1599_p9 = scmp.lt.s32.totalorder %s1861_s21, 4 }
  0x16   : > { %p1947_p10 = por %p145_p7, %p42_p0  ;;  %s2347_s6 = sand.u32 1, %s1857_s20  }
  0x17   : > { %p1951_p11 = por %p151_p8, %p48_p3  ;;  %s1957_s7 = sshll.u32 %s1861_s21, 10 }
  0x18   : > { %s2356_s29 = scalar_select %p1947_p10, 1, 0 }
  0x19   : > { %s2357_s30 = scalar_select %p1951_p11, 1, 0 }
  0x1a   : > { %s1961_s8 = sshll.u32 %s2347_s6, 6  ;;  %p1963_p12 = pnand %p1599_p9, %p44_p5 }
  0x1b   : > { %s222_s10 = sand.u32 1, %s1861_s21   ;;  %s2359_s1 = sld [smem:[#allocation17_spill]] }
  0x1c   : > { %s226_s14 = scalar_lea.vmem [#allocation5], %s1961_s8  ;;  %s1978_s16 = scalar_lea.sflag [#allocation6], %s222_s10 }
  0x1d   : > { %s234_s15 = sshll.u32 %s226_s14, 4  ;;  %p1984_p1 = pneg %p1963_p12  ;;  %s1975_s15 = int_to_ptr.vmem [resolvable:$true] %s234_s15 }
  0x21   : > { %s1972_s13 = scalar_lea.hbm %s2359_s1, %s1957_s7  ;;  %s1674_s11 = scalar_lea.hbm %s2359_s1, 4096 }
  0x22   : > { %s1669_s17 = scalar_lea.hbm %s1972_s13, 1024  ;;  %p1675_p4 = scmp.lt.u32.totalorder %s1972_s13, %s2359_s1 }
  0x23   : > { %p1670_p0 = scmp.ne.s32.totalorder %s1972_s13, %s1669_s17  ;;  %p1676_p5 = scmp.lt.u32.totalorder %s1674_s11, %s1669_s17 }
  0x24   : > { %p1678_p8 = scmp.lt.u32.totalorder %s1669_s17, %s1972_s13 }
  0x25   : > { %p1672_p2 = pnand %p1984_p1, %p1670_p0  ;;  %p1677_p7 = por %p1676_p5, %p1675_p4 }
  0x27   : > { %p1673_p3 = pneg %p1672_p2  ;;  %p1679_p9 = por %p1678_p8, %p1677_p7 }
  0x29   : > { %p1680_p13 = pnand %p1679_p9, %p1673_p3 }
  0x2b   : > { %1683 = shalt.err (!%p1680_p13)
}
  0x2c   : > { %s1684_s10 = scalar_lea.vmem %s1975_s15, 1024  ;;  %s1863_s25 = smov [#allocation5]  }
  0x2d   : > { %p1685_p0 = scmp.ne.s32.totalorder %s1975_s15, %s1684_s10  ;;  %s1689_s26 = sshll.u32 %s1863_s25, 4  ;;  %s1690_s26 = int_to_ptr.vmem [resolvable:$false] %s1689_s26 }
  0x2e   : > { %s1691_s12 = scalar_lea.vmem %s1690_s26, 2048  ;;  %p1692_p10 = scmp.lt.s32.totalorder %s1975_s15, %s1690_s26 }
  0x2f   : > { %p1687_p2 = pnand %p1685_p0, %p1984_p1  ;;  %p1693_p6 = scmp.lt.s32.totalorder %s1691_s12, %s1684_s10 }
  0x31   : > { %p1688_p11 = pneg %p1687_p2  ;;  %p1694_p4 = por %p1693_p6, %p1692_p10 }
  0x33   : > { %p1695_p5 = pnand %p1694_p4, %p1688_p11 }
  0x35   : > { %1698 = shalt.err (!%p1695_p5)
}
  0x36   : > { %s2348_s17 = smov 128   ;;  %s2350_s11 = smov 8  }
  0x37   : > { %1588 = dma.hbm_to_vmem [thread:$0]  (!%p1963_p12), %s1972_s13, 1024, %s1975_s15, %s1978_s16, %s2348_s17, %s2348_s17, %s2350_s11  }
  0x38   : > { %p264_p6 = scmp.lt.s32.totalorder %s1861_s21, 5  ;;  %s2361_s0 = sld [smem:[#allocation16_spill]] }
  0x39   : > { %p2362_p10 = scmp.ge.s32.totalorder %s1861_s21, 1  ;;  %s204_s12 = scalar_lea.vmem [#allocation2], %s1961_s8 }
  0x3a   : > { %s212_s6 = sshll.u32 %s204_s12, 4  ;;  %s2364_s13 = sand.u32 1, %s1857_s20   ;;  %s2025_s6 = int_to_ptr.vmem [resolvable:$true] %s212_s6 }
  0x3b   : > { %p2020_p11 = pnand %p2362_p10, %p264_p6  ;;  %s2029_s15 = scalar_lea.sflag [#allocation3], %s2364_s13 }
  0x3d   : > { %s2363_s26 = scalar_select %p2020_p11, 1, 0 }
  0x3e   : > { %s2016_s25 = scalar_lea.hbm %s2361_s0, %s1957_s7  ;;  %s1704_s11 = scalar_lea.hbm %s2361_s0, 4096 }
  0x3f   : > { %s1699_s17 = scalar_lea.hbm %s2016_s25, 1024  ;;  %p1705_p8 = scmp.lt.u32.totalorder %s2016_s25, %s2361_s0 }
  0x40   : > { %p1700_p13 = scmp.ne.s32.totalorder %s2016_s25, %s1699_s17  ;;  %p1706_p9 = scmp.lt.u32.totalorder %s1704_s11, %s1699_s17 }
  0x41   : > { %p1708_p2 = scmp.lt.u32.totalorder %s1699_s17, %s2016_s25 }
  0x42   : > { %p1702_p3 = pnand %p1700_p13, %p1984_p1  ;;  %p1707_p0 = por %p1706_p9, %p1705_p8 }
  0x44   : > { %p1703_p7 = pneg %p1702_p3  ;;  %p1709_p4 = por %p1708_p2, %p1707_p0 }
  0x46   : > { %p1710_p5 = pnand %p1709_p4, %p1703_p7 }
  0x48   : > { %1713 = shalt.err (!%p1710_p5)
}
  0x49   : > { %s1714_s12 = scalar_lea.vmem %s2025_s6, 1024  ;;  %s1866_s13 = smov [#allocation2]  }
  0x4a   : > { %p1715_p6 = scmp.ne.s32.totalorder %s2025_s6, %s1714_s12  ;;  %s1719_s14 = sshll.u32 %s1866_s13, 4  ;;  %s1720_s14 = int_to_ptr.vmem [resolvable:$false] %s1719_s14 }
  0x4b   : > { %s1721_s1 = scalar_lea.vmem %s1720_s14, 2048  ;;  %p1722_p3 = scmp.lt.s32.totalorder %s2025_s6, %s1720_s14 }
  0x4c   : > { %p1717_p10 = pnand %p1715_p6, %p1984_p1  ;;  %p1723_p11 = scmp.lt.s32.totalorder %s1721_s1, %s1714_s12 }
  0x4e   : > { %p1718_p13 = pneg %p1717_p10  ;;  %p1724_p8 = por %p1723_p11, %p1722_p3 }
  0x50   : > { %p1725_p9 = pnand %p1724_p8, %p1718_p13 }
  0x52   : > { %1728 = shalt.err (!%p1725_p9)
}
  0x53   : > { %s2365_s27 = smov 8   ;;  %s2366_s17 = smov 128  }
  0x54   : > { %1585 = dma.hbm_to_vmem [thread:$0]  (!%p1963_p12), %s2016_s25, 1024, %s2025_s6, %s2029_s15, %s2366_s17, %s2366_s17, %s2365_s27  }
  0x55   : > { %s2060_s13 = scalar_lea.hbm %s2341_s2, %s1957_s7  ;;  %s248_s12 = scalar_lea.vmem [#allocation7], %s1961_s8 }
  0x56   : > { %s256_s14 = sshll.u32 %s248_s12, 4  ;;  %s1729_s1 = scalar_lea.hbm %s2060_s13, 1024  ;;  %s2063_s14 = int_to_ptr.vmem [resolvable:$true] %s256_s14 }
  0x57   : > { %p1730_p11 = scmp.ne.s32.totalorder %s2060_s13, %s1729_s1  ;;  %s1734_s25 = scalar_lea.hbm %s2341_s2, 4096 }
  0x58   : > { %p1735_p2 = scmp.lt.u32.totalorder %s2060_s13, %s2341_s2  ;;  %p1736_p4 = scmp.lt.u32.totalorder %s1734_s25, %s1729_s1 }
  0x59   : > { %p1732_p7 = pnand %p1730_p11, %p1984_p1  ;;  %p1738_p6 = scmp.lt.u32.totalorder %s1729_s1, %s2060_s13 }
  0x5a   : > { %p1737_p5 = por %p1736_p4, %p1735_p2 }
  0x5b   : > { %p1733_p0 = pneg %p1732_p7 }
  0x5c   : > { %p1739_p10 = por %p1738_p6, %p1737_p5 }
  0x5e   : > { %p1740_p13 = pnand %p1739_p10, %p1733_p0 }
  0x60   : > { %1743 = shalt.err (!%p1740_p13)
}
  0x61   : > { %s1744_s8 = scalar_lea.vmem %s2063_s14, 1024  ;;  %s1867_s0 = smov [#allocation7]  }
  0x62   : > { %p1745_p3 = scmp.ne.s32.totalorder %s2063_s14, %s1744_s8  ;;  %s1749_s11 = sshll.u32 %s1867_s0, 4  ;;  %s1750_s11 = int_to_ptr.vmem [resolvable:$false] %s1749_s11 }
  0x63   : > { %s1751_s10 = scalar_lea.vmem %s1750_s11, 2048  ;;  %p1752_p11 = scmp.lt.s32.totalorder %s2063_s14, %s1750_s11 }
  0x64   : > { %p1747_p8 = pnand %p1745_p3, %p1984_p1  ;;  %p1753_p7 = scmp.lt.s32.totalorder %s1751_s10, %s1744_s8 }
  0x66   : > { %p1748_p9 = pneg %p1747_p8  ;;  %p1754_p2 = por %p1753_p7, %p1752_p11 }
  0x68   : > { %p1755_p4 = pnand %p1754_p2, %p1748_p9 }
  0x6a   : > { %1758 = shalt.err (!%p1755_p4)
}
  0x6b   : > { %1591 = dma.hbm_to_vmem [thread:$0]  (!%p1963_p12), %s2060_s13, 1024, %s2063_s14, %s1978_s16, %s2366_s17, %s2366_s17, %s2365_s27  }
  0x6c   : > { %p2367_p1 = scmp.ne.s32.totalorder %s2363_s26, 0 }
  0x6d   : > { %s2093_s23 = sand.u32 (!%p2367_p1), 1, %s1853_s19   ;;  %p2368_p0 = scmp.ne.s32.totalorder (!%p2367_p1), %s2355_s28, 0 }
  0x6e   : > { %268 = sbr.rel (%p2367_p1) target bundleno = 908 (0x38c), region = 36  ;;  %s2096_s12 = sshll.u32 (!%p2367_p1), %s2093_s23, 6 }
  0x6f   : > { %s271_s9 = scalar_lea.sflag (!%p2367_p1), [#allocation3], %s2093_s23  ;;  %s2100_s1 = scalar_lea.vmem (!%p2367_p1), [#allocation2], %s2096_s12 }
  0x75   : > { %1832 = dma.done.wait (%p2368_p0), %s271_s9, 1024  }
  0x76   : > { %1834 = vsyncadd (%p2368_p0), %s271_s9, 4294966272  ;;  %s279_s16 = sand.u32 1, %s1923_s22   ;;  %s283_s27 = scalar_lea.vmem [#allocation5], %s2096_s12 }
  0x77   : > { %s280_s26 = scalar_lea.sflag [#allocation6], %s279_s16 }
  0x78   : > { %1836 = dma.done.wait (%p2368_p0), %s280_s26, 2048  }
  0x79   : > { %1838 = vsyncadd (%p2368_p0), %s280_s26, 4294965248  ;;  %vm363_vm0 = vcmask 261120   ;;  %v347_v1 = vld [vmem:[%s283_s27] sm:$0xff]  ;;  %v348_v2 = vld [vmem:[%s283_s27 + $0x8] sm:$0xff]  ;;  %vm738_vm2 = vcmask 130048   ;;  %s292_s13 = scalar_lea.vmem [#allocation7], %s2096_s12 }
  0x7a   : > { %vm2114_vm1 = vmpackc.low %vm363_vm0, %vm363_vm0  ;;  %v349_v3 = vld [vmem:[%s283_s27 + $0x10] sm:$0xff]  ;;  %v1532_v4 = vpack.c.bf16 %v348_v2, %v347_v1  ;;  %v350_v5 = vld [vmem:[%s283_s27 + $0x18] sm:$0xff]  ;;  %s2208_s14 = scalar_lea.vmem [#allocation9], %s2096_s12  ;;  %s1437_s6 = sshll.u32 %s1923_s22, 10 }
  0x7b   : > { %v339_v6 = vld [vmem:[%s2100_s1] sm:$0xff]  ;;  %v1538_v7 = vpack.c.bf16 %v350_v5, %v349_v3  ;;  %v341_v8 = vld [vmem:[%s2100_s1 + $0x10] sm:$0xff]  ;;  %v352_v10 = vld [vmem:[%s283_s27 + $0x28] sm:$0xff]  ;;  %s2245_s7 = scalar_lea.hbm %s2344_s5, %s1437_s6  ;;  %s1225_s8 = sshll.u32 %s2208_s14, 4  ;;  %s2248_s8 = int_to_ptr.vmem [resolvable:$true] %s1225_s8 }
  0x7c   : > { %1480 = vmatprep.mubr.msk.f32.mxu0 %vm363_vm0, %v339_v6  ;;  %v351_v9 = vld [vmem:[%s283_s27 + $0x20] sm:$0xff]  ;;  %1534 = vmatprep.subr.msk.bf16.mxu0 %vm2114_vm1, %v1532_v4  ;;  %v353_v12 = vld [vmem:[%s283_s27 + $0x30] sm:$0xff]  ;;  %v354_v13 = vld [vmem:[%s283_s27 + $0x38] sm:$0xff]  ;;  %s1194_s0 = scalar_lea.sflag [#allocation10], %s2093_s23  ;;  %s1759_s11 = scalar_lea.vmem %s2248_s8, 1024 }
  0x7d   : > { %1487 = vmatprep.mubr.msk.f32.mxu1 %vm363_vm0, %v341_v8  ;;  %v1544_v11 = vpack.c.bf16 %v352_v10, %v351_v9  ;;  %1540 = vmatprep.subr.msk.bf16.mxu1 %vm2114_vm1, %v1538_v7  ;;  %v1550_v14 = vpack.c.bf16 %v354_v13, %v353_v12  ;;  %v340_v15 = vld [vmem:[%s2100_s1 + $0x8] sm:$0xff]  ;;  %v342_v16 = vld [vmem:[%s2100_s1 + $0x18] sm:$0xff]  ;;  %v343_v17 = vld [vmem:[%s2100_s1 + $0x20] sm:$0xff]  ;;  %p1760_p12 = scmp.ne.s32.totalorder %s2248_s8, %s1759_s11  ;;  %p2371_p5 = scmp.ne.s32.totalorder %s2356_s29, 0 }
  0x7e   : > { %1537 = vmatpush3.bf16.xpose.msk.msra.mxu0 %vm2114_vm1, %v1532_v4  ;;  %1543 = vmatpush3.bf16.xpose.msk.msra.mxu1 %vm2114_vm1, %v1538_v7  ;;  %v345_v18 = vld [vmem:[%s2100_s1 + $0x30] sm:$0xff]  ;;  %v344_v19 = vld [vmem:[%s2100_s1 + $0x28] sm:$0xff]  ;;  %v346_v20 = vld [vmem:[%s2100_s1 + $0x38] sm:$0xff]  ;;  %s1868_s10 = smov [#allocation9]  }
  0x7f   : > { %1546 = vmatprep.subr.msk.bf16.mxu0 %vm2114_vm1, %v1544_v11  ;;  %1552 = vmatprep.subr.msk.bf16.mxu1 %vm2114_vm1, %v1550_v14  ;;  %v1441_v21 = vld [vmem:[%s2342_s3] sm:$0xf]   ;;  %p1761_p6 = pnand %p1760_p12, %p2371_p5  ;;  %s1763_s9 = sshll.u32 %s1868_s10, 4  ;;  %s1764_s9 = int_to_ptr.vmem [resolvable:$false] %s1763_s9 }
  0x80   : > { %v1443_v22 = vunpack.c.1.s8 %v1441_v21  ;;  %v1442_v23 = vunpack.c.0.s8 %v1441_v21  ;;  %s1765_s1 = scalar_lea.vmem %s1764_s9, 2048  ;;  %p1766_p13 = scmp.lt.s32.totalorder %s2248_s8, %s1764_s9 }
  0x81   : > { %p1762_p10 = pneg %p1761_p6  ;;  %p1767_p3 = scmp.lt.s32.totalorder %s1765_s1, %s1759_s11 }
  0x82   : > { %v2153_v24 = vcvt.s32.f32 %v1443_v22  ;;  %v2155_v25 = vcvt.s32.f32 %v1442_v23 }
  0x83   : > { %p1768_p8 = por %p1767_p3, %p1766_p13 }
  0x84   : > { %v1411_v26 = vadd.f32 -1.0, %v2153_v24  ;;  %v1410_v27 = vadd.f32 -1.0, %v2155_v25 }
  0x85   : > { %1481 = vmatmul.mubr.msk.f32.vlgmr.msra.gmra.mrb[0].mxu0 %vm363_vm0, %v340_v15  ;;  %1488 = vmatmul.mubr.msk.f32.vlgmr.msra.gmra.mrb[0].mxu1 %vm363_vm0, %v342_v16  ;;  %p1769_p9 = pnand %p1768_p8, %p1762_p10 }
  0x86   : > { %1549 = vmatpush3.bf16.xpose.msk.msra.mxu0 %vm2114_vm1, %v1544_v11  ;;  %1555 = vmatpush3.bf16.xpose.msk.msra.mxu1 %vm2114_vm1, %v1550_v14  ;;  %v721_v28 = vmul.f32 1e+32, %v1411_v26  ;;  %v720_v30 = vmul.f32 1e+32, %v1410_v27 }
  0x87   : > { %1494 = vmatprep.mubr.msk.f32.mxu0 %vm363_vm0, %v343_v17  ;;  %1501 = vmatprep.mubr.msk.f32.mxu1 %vm363_vm0, %v345_v18 }
  0x8d   : > { %1495 = vmatmul.mubr.msk.f32.vlgmr.msra.gmra.mrb[2].mxu0 %vm363_vm0, %v344_v19  ;;  %1502 = vmatmul.mubr.msk.f32.vlgmr.msra.gmra.mrb[2].mxu1 %vm363_vm0, %v346_v20 }
 0x158   : > { %v1482_v29 = vpop.f32.mrb[0].mxu0  ;;  %v1489_v33 = vpop.f32.mrb[0].mxu1 }
 0x159   : > { %v723_v31 = vmul.f32 0.17677669, %v1482_v29  ;;  %v442_v32 = vpop.f32.mrb[1].mxu0  ;;  %v725_v35 = vmul.f32 0.17677669, %v1489_v33  ;;  %v529_v36 = vpop.f32.mrb[1].mxu1 }
 0x15a   : > { %v722_v34 = vmul.f32 0.17677669, %v442_v32  ;;  %v724_v37 = vmul.f32 0.17677669, %v529_v36 }
 0x15b   : > { %v731_v38 = vadd.f32 %v723_v31, %v721_v28  ;;  %v733_v40 = vadd.f32 %v725_v35, %v721_v28 }
 0x15c   : > { %v730_v39 = vadd.f32 %v722_v34, %v720_v30  ;;  %v732_v42 = vadd.f32 %v724_v37, %v720_v30 }
 0x15d   : > { %v742_v41 = vsel %vm738_vm2, %v731_v38, -inf  ;;  %v748_v44 = vsel %vm738_vm2, %v733_v40, -inf }
 0x15e   : > { %743 = vmax.xlane.f32.xlu1 %v742_v41  ;;  %v739_v43 = vsel %vm738_vm2, %v730_v39, -inf  ;;  %v745_v46 = vsel %vm738_vm2, %v732_v42, -inf  ;;  %v822_v41 = vsel %vm738_vm2, %v2153_v24, -inf }
 0x15f   : > { %740 = vmax.xlane.f32.xlu0 %v739_v43  ;;  %v356_v43 = vld [vmem:[%s292_s13 + $0x8] sm:$0xff] }
 0x160   : > { %v1496_v45 = vpop.f32.mrb[2].mxu0  ;;  %v1503_v47 = vpop.f32.mrb[2].mxu1 }
 0x161   : > { %v616_v48 = vpop.f32.mrb[3].mxu0  ;;  %v727_v49 = vmul.f32 0.17677669, %v1496_v45  ;;  %v703_v51 = vpop.f32.mrb[3].mxu1  ;;  %v729_v52 = vmul.f32 0.17677669, %v1503_v47 }
 0x162   : > { %v726_v50 = vmul.f32 0.17677669, %v616_v48  ;;  %749 = vmax.xlane.f32.xlu1 %v748_v44  ;;  %v728_v53 = vmul.f32 0.17677669, %v703_v51  ;;  %v357_v44 = vld [vmem:[%s292_s13 + $0x10] sm:$0xff]  ;;  %v360_v48 = vld [vmem:[%s292_s13 + $0x28] sm:$0xff] }
 0x163   : > { %746 = vmax.xlane.f32.xlu0 %v745_v46  ;;  %v735_v57 = vadd.f32 %v727_v49, %v721_v28  ;;  %v737_v59 = vadd.f32 %v729_v52, %v721_v28  ;;  %v358_v46 = vld [vmem:[%s292_s13 + $0x18] sm:$0xff] }
 0x164   : > { %v734_v54 = vadd.f32 %v726_v50, %v720_v30  ;;  %v736_v55 = vadd.f32 %v728_v53, %v720_v30  ;;  %v1560_v47 = vpack.c.bf16 %v358_v46, %v357_v44  ;;  %v361_v50 = vld [vmem:[%s292_s13 + $0x30] sm:$0xff]  ;;  %v362_v51 = vld [vmem:[%s292_s13 + $0x38] sm:$0xff] }
 0x165   : > { %v754_v60 = vsel %vm738_vm2, %v735_v57, -inf  ;;  %v760_v61 = vsel %vm738_vm2, %v737_v59, -inf  ;;  %v1568_v52 = vpack.c.bf16 %v362_v51, %v361_v50 }
 0x166   : > { %v751_v56 = vsel %vm738_vm2, %v734_v54, -inf  ;;  %v757_v58 = vsel %vm738_vm2, %v736_v55, -inf  ;;  %1561 = vmatprep.subr.bf16.mxu1 %v1560_v47 }
 0x167   : > { %752 = vmax.xlane.f32.xlu0 %v751_v56  ;;  %758 = vmax.xlane.f32.xlu1 %v757_v58 }
 0x168   : > { %1563 = vmatpush3.bf16.msra.mxu1 %v1560_v47 }
 0x169   : > { %1569 = vmatprep.subr.bf16.mxu1 %v1568_v52 }
 0x16b   : > { %755 = vmax.xlane.f32.xlu0 %v754_v60  ;;  %761 = vmax.xlane.f32.xlu1 %v760_v61 }
 0x1eb   : > { %v744_v62 = vpop.xlane.xlu1 %743 }
 0x1ec   : > { %v764_v63 = vsub.f32 %v731_v38, %v744_v62  ;;  %v741_v0 = vpop.xlane.xlu0 %740 }
 0x1ed   : > { %v763_v1 = vsub.f32 %v730_v39, %v741_v0  ;;  %v819_v39 = vsel %vm738_vm2, %v2155_v25, -inf  ;;  %v359_v25 = vld [vmem:[%s292_s13 + $0x20] sm:$0xff] }
 0x1ee   : > { %v773_v2 = vmul.f32 1.442695, %v764_v63  ;;  %v1564_v49 = vpack.c.bf16 %v360_v48, %v359_v25 }
 0x1ef   : > { %v771_v3 = vmul.f32 1.442695, %v763_v1  ;;  %v750_v4 = vpop.xlane.xlu1 %749 }
 0x1f0   : > { %1637 = vpow2.f32 %v773_v2  ;;  %v766_v5 = vsub.f32 %v733_v40, %v750_v4  ;;  %v747_v6 = vpop.xlane.xlu0 %746 }
 0x1f1   : > { %v765_v7 = vsub.f32 %v732_v42, %v747_v6  ;;  %1639 = vpow2.f32 %v771_v3  ;;  %v355_v42 = vld [vmem:[%s292_s13] sm:$0xff] }
 0x1f2   : > { %v777_v8 = vmul.f32 1.442695, %v766_v5  ;;  %v1556_v45 = vpack.c.bf16 %v356_v43, %v355_v42 }
 0x1f3   : > { %v775_v9 = vmul.f32 1.442695, %v765_v7 }
 0x1f4   : > { %1641 = vpow2.f32 %v777_v8  ;;  %v753_v10 = vpop.xlane.xlu0 %752  ;;  %v759_v11 = vpop.xlane.xlu1 %758  ;;  %1557 = vmatprep.subr.bf16.mxu0 %v1556_v45 }
 0x1f5   : > { %v767_v12 = vsub.f32 %v734_v54, %v753_v10  ;;  %1643 = vpow2.f32 %v775_v9  ;;  %v769_v13 = vsub.f32 %v736_v55, %v759_v11  ;;  %1559 = vmatpush3.bf16.msra.mxu0 %v1556_v45  ;;  %v825_v55 = vlaneseq }
 0x1f6   : > { %1565 = vmatprep.subr.bf16.mxu0 %v1564_v49 }
 0x1f7   : > { %v779_v14 = vmul.f32 1.442695, %v767_v12  ;;  %v783_v15 = vmul.f32 1.442695, %v769_v13  ;;  %v826_v58 = vshrl.u32 %v825_v55, 7 }
 0x1f8   : > { %v756_v16 = vpop.xlane.xlu0 %755  ;;  %v762_v17 = vpop.xlane.xlu1 %761 }
 0x1f9   : > { %1645 = vpow2.f32 %v779_v14  ;;  %v768_v18 = vsub.f32 %v735_v57, %v756_v16  ;;  %v770_v20 = vsub.f32 %v737_v59, %v762_v17  ;;  %vm828_vm3 = vcmp.eq.s32.totalorder %v826_v58, 0 }
 0x1fa   : > { %v2167_v19 = vpop.eup %1637  ;;  %1647 = vpow2.f32 %v783_v15 }
 0x1fb   : > { %v781_v21 = vmul.f32 1.442695, %v768_v18  ;;  %v790_v22 = vsel %vm738_vm2, %v2167_v19, 0.0  ;;  %v2171_v23 = vpop.eup %1639  ;;  %v785_v26 = vmul.f32 1.442695, %v770_v20 }
 0x1fc   : > { %791 = vadd.xlane.f32.xlu0 %v790_v22  ;;  %v787_v29 = vsel %vm738_vm2, %v2171_v23, 0.0 }
 0x1fd   : > { %1649 = vpow2.f32 %v781_v21 }
 0x1fe   : > { %v2173_v27 = vpop.eup %1641  ;;  %1651 = vpow2.f32 %v785_v26 }
 0x1ff   : > { %v796_v28 = vsel %vm738_vm2, %v2173_v27, 0.0  ;;  %v2179_v30 = vpop.eup %1643 }
 0x200   : > { %797 = vadd.xlane.f32.xlu1 %v796_v28  ;;  %788 = vadd.xlane.f32.xlu0 %v787_v29  ;;  %v793_v32 = vsel %vm738_vm2, %v2179_v30, 0.0 }
 0x203   : > { %v2181_v31 = vpop.eup %1645 }
 0x204   : > { %v2185_v33 = vpop.eup %1647  ;;  %794 = vadd.xlane.f32.xlu1 %v793_v32  ;;  %v799_v34 = vsel %vm738_vm2, %v2181_v31, 0.0 }
 0x205   : > { %800 = vadd.xlane.f32.xlu0 %v799_v34  ;;  %v805_v36 = vsel %vm738_vm2, %v2185_v33, 0.0 }
 0x207   : > { %v2189_v35 = vpop.eup %1649 }
 0x208   : > { %v2193_v37 = vpop.eup %1651  ;;  %806 = vadd.xlane.f32.xlu1 %v805_v36  ;;  %v802_v38 = vsel %vm738_vm2, %v2189_v35, 0.0 }
 0x209   : > { %803 = vadd.xlane.f32.xlu0 %v802_v38  ;;  %v808_v40 = vsel %vm738_vm2, %v2193_v37, 0.0 }
 0x20c   : > { %809 = vadd.xlane.f32.xlu1 %v808_v40 }
 0x20d   : > { %820 = vmax.xlane.f32.xlu0 %v819_v39 }
 0x210   : > { %823 = vmax.xlane.f32.xlu1 %v822_v41 }
 0x289   : > { %v792_v24 = vpop.xlane.xlu0 %791 }
 0x28a   : > { %1653 = vrcp.f32 %v792_v24 }
 0x28d   : > { %v798_v53 = vpop.xlane.xlu1 %797  ;;  %v789_v54 = vpop.xlane.xlu0 %788 }
 0x28e   : > { %1655 = vrcp.f32 %v798_v53 }
 0x28f   : > { %1657 = vrcp.f32 %v789_v54 }
 0x291   : > { %v795_v56 = vpop.xlane.xlu1 %794 }
 0x292   : > { %1659 = vrcp.f32 %v795_v56  ;;  %v801_v57 = vpop.xlane.xlu0 %800 }
 0x293   : > { %1661 = vrcp.f32 %v801_v57 }
 0x294   : > { %v1654_v61 = vpop.eup %1653 }
 0x295   : > { %v807_v59 = vpop.xlane.xlu1 %806 }
 0x296   : > { %1663 = vrcp.f32 %v807_v59  ;;  %v804_v60 = vpop.xlane.xlu0 %803 }
 0x297   : > { %1665 = vrcp.f32 %v804_v60 }
 0x298   : > { %v1656_v63 = vpop.eup %1655 }
 0x299   : > { %v810_v62 = vpop.xlane.xlu1 %809  ;;  %v1658_v1 = vpop.eup %1657 }
 0x29a   : > { %1667 = vrcp.f32 %v810_v62  ;;  %v821_v0 = vpop.xlane.xlu0 %820 }
 0x29b   : > { %v830_v2 = vsel %vm828_vm3, 0.0, %v821_v0 }
 0x29c   : > { %v1660_v3 = vpop.eup %1659  ;;  %v832_v4 = vmul.f32 %v1658_v1, %v830_v2 }
 0x29d   : > { %v1662_v5 = vpop.eup %1661  ;;  %v834_v6 = vmul.f32 %v1660_v3, %v830_v2  ;;  %v824_v7 = vpop.xlane.xlu1 %823 }
 0x29e   : > { %v836_v8 = vmul.f32 %v1662_v5, %v830_v2  ;;  %v840_v9 = vmul.f32 %v2171_v23, %v832_v4  ;;  %v833_v10 = vmul.f32 %v1654_v61, %v824_v7  ;;  %v835_v11 = vmul.f32 %v1656_v63, %v824_v7 }
 0x29f   : > { %v842_v12 = vmul.f32 %v2179_v30, %v834_v6 }
 0x2a0   : > { %v1664_v13 = vpop.eup %1663  ;;  %v844_v14 = vmul.f32 %v2181_v31, %v836_v8  ;;  %1180 = vst.msk [vmem:[%s2208_s14] sm:$0xff] %vm738_vm2, %v840_v9  ;;  %v841_v15 = vmul.f32 %v2167_v19, %v833_v10  ;;  %v843_v16 = vmul.f32 %v2173_v27, %v835_v11  ;;  %1508 = vmatprep.mubr.msk.f32.mxu0 %vm738_vm2, %v840_v9 }
 0x2a1   : > { %v1666_v17 = vpop.eup %1665  ;;  %v838_v18 = vmul.f32 %v1664_v13, %v830_v2  ;;  %1182 = vst.msk [vmem:[%s2208_s14 + $0x10] sm:$0xff] %vm738_vm2, %v842_v12  ;;  %1515 = vmatprep.mubr.msk.f32.mxu1 %vm738_vm2, %v842_v12 }
 0x2a2   : > { %1184 = vst.msk [vmem:[%s2208_s14 + $0x20] sm:$0xff] %vm738_vm2, %v844_v14  ;;  %v837_v20 = vmul.f32 %v1666_v17, %v824_v7  ;;  %1181 = vst.msk [vmem:[%s2208_s14 + $0x8] sm:$0xff] %vm738_vm2, %v841_v15  ;;  %1509 = vmatmul.mubr.msk.f32.vlgmr.msra.gmra.mrb[4].mxu0 %vm738_vm2, %v841_v15  ;;  %1516 = vmatmul.mubr.msk.f32.vlgmr.msra.gmra.mrb[4].mxu1 %vm738_vm2, %v843_v16 }
 0x2a3   : > { %1183 = vst.msk [vmem:[%s2208_s14 + $0x18] sm:$0xff] %vm738_vm2, %v843_v16  ;;  %v846_v19 = vmul.f32 %v2185_v33, %v838_v18  ;;  %1567 = vmatpush3.bf16.msra.mxu0 %v1564_v49  ;;  %1522 = vmatprep.mubr.msk.f32.mxu0 %vm738_vm2, %v844_v14 }
 0x2a4   : > { %v1668_v21 = vpop.eup %1667  ;;  %v845_v22 = vmul.f32 %v2189_v35, %v837_v20  ;;  %1571 = vmatpush3.bf16.msra.mxu1 %v1568_v52 }
 0x2a5   : > { %1186 = vst.msk [vmem:[%s2208_s14 + $0x30] sm:$0xff] %vm738_vm2, %v846_v19  ;;  %v839_v23 = vmul.f32 %v1668_v21, %v824_v7  ;;  %1529 = vmatprep.mubr.msk.f32.mxu1 %vm738_vm2, %v846_v19 }
 0x2a6   : > { %1185 = vst.msk [vmem:[%s2208_s14 + $0x28] sm:$0xff] %vm738_vm2, %v845_v22  ;;  %1523 = vmatmul.mubr.msk.f32.vlgmr.msra.gmra.mrb[6].mxu0 %vm738_vm2, %v845_v22 }
 0x2a7   : > { %v847_v26 = vmul.f32 %v2193_v37, %v839_v23 }
 0x2a9   : > { %1187 = vst.msk [vmem:[%s2208_s14 + $0x38] sm:$0xff] %vm738_vm2, %v847_v26  ;;  %1530 = vmatmul.mubr.msk.f32.vlgmr.msra.gmra.mrb[6].mxu1 %vm738_vm2, %v847_v26 }
 0x2aa   : > { %1772 = shalt.err (!%p1769_p9)
}
 0x2ab   : > { %s1773_s16 = scalar_lea.hbm %s2245_s7, 1024  ;;  %s1777_s28 = scalar_lea.hbm %s2344_s5, 4096 }
 0x2ac   : > { %p1774_p11 = scmp.ne.s32.totalorder %s2245_s7, %s1773_s16  ;;  %p1778_p4 = scmp.lt.u32.totalorder %s2245_s7, %s2344_s5 }
 0x2ad   : > { %p1779_p1 = scmp.lt.u32.totalorder %s1777_s28, %s1773_s16  ;;  %p1781_p12 = scmp.lt.u32.totalorder %s1773_s16, %s2245_s7 }
 0x2ae   : > { %p1775_p7 = pnand %p1774_p11, %p2371_p5 }
 0x2af   : > { %p1780_p0 = por %p1779_p1, %p1778_p4 }
 0x2b0   : > { %p1776_p2 = pneg %p1775_p7 }
 0x2b1   : > { %p1782_p6 = por %p1781_p12, %p1780_p0 }
 0x2b3   : > { %p1783_p10 = pnand %p1782_p6, %p1776_p2 }
 0x2b5   : > { %1786 = shalt.err (!%p1783_p10)
}
 0x2b6   : > { %s1869_s14 = smov 128   ;;  %s1870_s25 = smov 8  }
 0x2b7   : > { %1579 = dma.vmem_to_hbm [thread:$0]  (%p2371_p5), %s2248_s8, 1024, %s2245_s7, %s1194_s0, %s1869_s14, %s1869_s14, %s1870_s25  }
 0x2b8   : > { %s326_s15 = scalar_lea.vmem [#allocation8], %s2096_s12  ;;  %s2291_s8 = scalar_lea.hbm %s2343_s4, %s1437_s6 }
 0x2b9   : > { %s1208_s11 = sshll.u32 %s326_s15, 4  ;;  %s1189_s0 = scalar_lea.sflag [#allocation4], %s2093_s23  ;;  %s2283_s11 = int_to_ptr.vmem [resolvable:$true] %s1208_s11 }
 0x2ba   : > { %s1787_s10 = scalar_lea.vmem %s2283_s11, 1024  ;;  %s1871_s9 = smov [#allocation8]  }
 0x2bb   : > { %p1788_p13 = scmp.ne.s32.totalorder %s2283_s11, %s1787_s10  ;;  %s1791_s1 = sshll.u32 %s1871_s9, 4  ;;  %s1792_s1 = int_to_ptr.vmem [resolvable:$false] %s1791_s1 }
 0x2bc   : > { %s1793_s22 = scalar_lea.vmem %s1792_s1, 2048  ;;  %p1794_p9 = scmp.lt.s32.totalorder %s2283_s11, %s1792_s1 }
 0x2bd   : > { %p1789_p3 = pnand %p1788_p13, %p2371_p5  ;;  %p1795_p11 = scmp.lt.s32.totalorder %s1793_s22, %s1787_s10 }
 0x2bf   : > { %p1790_p8 = pneg %p1789_p3  ;;  %p1796_p7 = por %p1795_p11, %p1794_p9 }
 0x2c1   : > { %p1797_p2 = pnand %p1796_p7, %p1790_p8 }
 0x375   : > { %v1510_v27 = vpop.f32.mrb[4].mxu0  ;;  %v1517_v28 = vpop.f32.mrb[4].mxu1 }
 0x376   : > { %1173 = vst.msk [vmem:[%s326_s15 + $0x8] sm:$0xff] %vm363_vm0, %v1510_v27  ;;  %1175 = vst.msk [vmem:[%s326_s15 + $0x18] sm:$0xff] %vm363_vm0, %v1517_v28  ;;  %v920_v29 = vpop.f32.mrb[5].mxu0  ;;  %v1001_v30 = vpop.f32.mrb[5].mxu1 }
 0x377   : > { %1172 = vst.msk [vmem:[%s326_s15] sm:$0xff] %vm363_vm0, %v920_v29  ;;  %1174 = vst.msk [vmem:[%s326_s15 + $0x10] sm:$0xff] %vm363_vm0, %v1001_v30 }
 0x379   : > { %v1524_v31 = vpop.f32.mrb[6].mxu0 }
 0x37a   : > { %1177 = vst.msk [vmem:[%s326_s15 + $0x28] sm:$0xff] %vm363_vm0, %v1524_v31  ;;  %v1082_v32 = vpop.f32.mrb[7].mxu0 }
 0x37b   : > { %1176 = vst.msk [vmem:[%s326_s15 + $0x20] sm:$0xff] %vm363_vm0, %v1082_v32 }
 0x37c   : > { %v1531_v33 = vpop.f32.mrb[6].mxu1 }
 0x37d   : > { %1179 = vst.msk [vmem:[%s326_s15 + $0x38] sm:$0xff] %vm363_vm0, %v1531_v33  ;;  %v1163_v34 = vpop.f32.mrb[7].mxu1 }
 0x37e   : > { %1178 = vst.msk [vmem:[%s326_s15 + $0x30] sm:$0xff] %vm363_vm0, %v1163_v34 }
 0x37f   : > { %1800 = shalt.err (!%p1797_p2)
}
 0x380   : > { %s1801_s6 = scalar_lea.hbm %s2291_s8, 1024  ;;  %s1805_s27 = scalar_lea.hbm %s2343_s4, 4096 }
 0x381   : > { %p1802_p4 = scmp.ne.s32.totalorder %s2291_s8, %s1801_s6  ;;  %p1806_p12 = scmp.lt.u32.totalorder %s2291_s8, %s2343_s4 }
 0x382   : > { %p1807_p6 = scmp.lt.u32.totalorder %s1805_s27, %s1801_s6  ;;  %p1809_p13 = scmp.lt.u32.totalorder %s1801_s6, %s2291_s8 }
 0x383   : > { %p1803_p1 = pnand %p1802_p4, %p2371_p5 }
 0x384   : > { %p1808_p10 = por %p1807_p6, %p1806_p12 }
 0x385   : > { %p1804_p0 = pneg %p1803_p1 }
 0x386   : > { %p1810_p3 = por %p1809_p13, %p1808_p10 }
 0x388   : > { %p1811_p8 = pnand %p1810_p3, %p1804_p0 }
 0x38a   : > { %1814 = shalt.err (!%p1811_p8)
}
 0x38b   : > { %1578 = dma.vmem_to_hbm [thread:$0]  (%p2371_p5), %s2283_s11, 1024, %s2291_s8, %s1189_s0, %s1869_s14, %s1869_s14, %s1870_s25  }
 0x38c PF: > { %p1600_p9 = scmp.ge.s32.totalorder %s1861_s21, 2  ;;  %s1240_s13 = sand.u32 1, %s1849_s18  }
 0x38d   : > { %p2372_p11 = scmp.ne.s32.totalorder %s2357_s30, 0  ;;  %s1241_s15 = scalar_lea.sflag [#allocation4], %s1240_s13 }
 0x38f   : > { %p1593_p7 = pnand %p1600_p9, %p2372_p11 }
 0x391   : > { %1840 = dma.done.wait (!%p1593_p7), %s1241_s15, 1024  }
 0x392   : > { %1842 = vsyncadd (!%p1593_p7), %s1241_s15, 4294966272  ;;  %s1250_s29 = scalar_lea.sflag [#allocation10], %s1240_s13 }
 0x393   : > { %1844 = dma.done.wait (!%p1593_p7), %s1250_s29, 1024  }
 0x394   : > { %1846 = vsyncadd (!%p1593_p7), %s1250_s29, 4294966272  ;;  %s2373_s23 = sld [smem:[#allocation15_spill]]  ;;  %p25_p5 = scmp.ge.s32.totalorder %s1927_s24, 6  }
 0x395   : > { %s2374_s18 = smov %s1853_s19  ;;  %s2375_s19 = smov %s1857_s20 }
 0x396   : > { %s2377_s21 = smov %s1927_s24  ;;  %27 = sbr.rel (!%p25_p5) target bundleno = 12 (0xc), region = 122 }
 0x39a   : > { %s2376_s20 = smov %s2373_s23 }
 0x39d   :  { %1255 = vsyncpa [#allocation3], 1 }
 0x39e   :  { %1257 = vsyncpa [#allocation3 + $0x1], 1 }
 0x39f   :  { %1258 = vsyncpa [#allocation6], 1 }
 0x3a0   :  { %1260 = vsyncpa [#allocation6 + $0x1], 1 }
 0x3a1   :  { %1261 = vsyncpa [#allocation4], 1 }
 0x3a2   :  { %1263 = vsyncpa [#allocation4 + $0x1], 1 }
 0x3a3   :  { %1264 = vsyncpa [#allocation10], 1 }
 0x3a4   :  { %1266 = vsyncpa [#allocation10 + $0x1], 1 }

</bundles_post_ra>
